<compile_context>
chip_gen: v6e
topology: v6e:2x2x1
jax: 0.10.0
libtpu: 0.0.40
codegen_flags: <defaults>
</compile_context>

<pallas_src>
import jax
import jax.numpy as jnp
from jax.experimental import pallas as pl
from jax.experimental.pallas import tpu as pltpu

# Logical (PyTorch) dims
IN_DIM = 27
HID_DIM = 120
OUT_DIM = 9

# Padded (TPU) dims
IN_PAD = 32      # input features padded 27 -> 32 (sublane-aligned K for fc1)
FEAT_PAD = 128   # hidden / output features padded to 128 lanes


def _qn_forward_kernel(x_ref, w_ref, b_ref, o_ref):
    # x_ref : (TILE_B, IN_PAD)   f32
    # w_ref : (3, 128, 128)      f32 or bf16  (row-padded; fc1 only uses first 32 rows)
    # b_ref : (3, 1, 128)        f32
    # o_ref : (TILE_B, 128)      f32
    w1 = w_ref[0, :IN_PAD, :]          # (32, 128)
    w2 = w_ref[1]                      # (128, 128)
    w3 = w_ref[2]                      # (128, 128)

    x = x_ref[...].astype(w1.dtype)
    h1 = jnp.dot(x, w1, preferred_element_type=jnp.float32) + b_ref[0]
    h1 = jnp.maximum(h1, 0.0)

    h2 = jnp.dot(h1.astype(w2.dtype), w2, preferred_element_type=jnp.float32) + b_ref[1]
    h2 = jnp.maximum(h2, 0.0)

    h3 = jnp.dot(h2.astype(w3.dtype), w3, preferred_element_type=jnp.float32) + b_ref[2]
    o_ref[...] = jnp.tanh(h3)


def prepare_params(params, dtype=jnp.float32):
    """One-time prep: transpose PyTorch (out,in) weights to (in,out), zero-pad to
    128x128, stack into (3,128,128); biases -> (3,1,128) f32. Call once, reuse."""
    w1, b1, w2, b2, w3, b3 = params

    def padw(w):
        wt = jnp.asarray(w, jnp.float32).T                      # (in, out)
        out = jnp.zeros((FEAT_PAD, FEAT_PAD), jnp.float32)
        out = out.at[: wt.shape[0], : wt.shape[1]].set(wt)
        return out.astype(dtype)

    def padb(b):
        out = jnp.zeros((1, FEAT_PAD), jnp.float32)
        return out.at[0, : b.shape[0]].set(jnp.asarray(b, jnp.float32))

    w_stack = jnp.stack([padw(w1), padw(w2), padw(w3)])          # (3, 128, 128)
    b_stack = jnp.stack([padb(b1), padb(b2), padb(b3)])          # (3, 1, 128)
    return w_stack, b_stack


def qn_agent_forward(x, w_stack, b_stack, *, tile_b=1024):
    """x: (B, 27) float32. Returns (B, 9) float32, matching QNAgent.forward."""
    B = x.shape[0]
    b8 = ((B + 7) // 8) * 8                      # round batch up to sublane multiple
    tb = max(8, min(int(tile_b), b8))            # batch tile (multiple of 8)
    tb = (tb // 8) * 8
    n_tiles = pl.cdiv(b8, tb)
    Bp = n_tiles * tb                            # pad to full tiles (no partial blocks)

    x_p = jnp.zeros((Bp, IN_PAD), jnp.float32).at[:B, :IN_DIM].set(
        x.astype(jnp.float32)
    )

    out_p = pl.pallas_call(
        _qn_forward_kernel,
        out_shape=jax.ShapeDtypeStruct((Bp, FEAT_PAD), jnp.float32),
        grid_spec=pltpu.PrefetchScalarGridSpec(
            num_scalar_prefetch=0,
            grid=(n_tiles,),
            in_specs=[
                pl.BlockSpec((tb, IN_PAD), lambda i: (i, 0)),
                pl.BlockSpec((3, FEAT_PAD, FEAT_PAD), lambda i: (0, 0, 0)),
                pl.BlockSpec((3, 1, FEAT_PAD), lambda i: (0, 0, 0)),
            ],
            out_specs=pl.BlockSpec((tb, FEAT_PAD), lambda i: (i, 0)),
        ),
        compiler_params=pltpu.CompilerParams(
            dimension_semantics=("parallel",),
        ),
    )(x_p, w_stack, b_stack)

    return out_p[:B, :OUT_DIM]


def init_params(key):
    """Deterministic init mirroring nn.Linear's U(-1/sqrt(fan_in), 1/sqrt(fan_in))."""
    ks = jax.random.split(key, 6)

    def linear(kw, kb, fan_in, fan_out):
        bound = 1.0 / jnp.sqrt(float(fan_in))
        w = jax.random.uniform(kw, (fan_out, fan_in), jnp.float32, -bound, bound)
        b = jax.random.uniform(kb, (fan_out,), jnp.float32, -bound, bound)
        return w, b

    w1, b1 = linear(ks[0], ks[1], IN_DIM, HID_DIM)
    w2, b2 = linear(ks[2], ks[3], HID_DIM, HID_DIM)
    w3, b3 = linear(ks[4], ks[5], HID_DIM, OUT_DIM)
    return (w1, b1, w2, b2, w3, b3)


def _reference_forward(x, params):
    w1, b1, w2, b2, w3, b3 = params
    h1 = jnp.maximum(x @ w1.T + b1, 0.0)
    h2 = jnp.maximum(h1 @ w2.T + b2, 0.0)
    return jnp.tanh(h2 @ w3.T + b3)


# TODO(synk): QNAgent.train (SGD Q-update) and act (argmax over legal actions) are
# host-side control flow / optimizer logic, not part of the forward pass kernel.

if __name__ == "__main__":
    key = jax.random.PRNGKey(0)
    k_params, k_x1, k_x2 = jax.random.split(key, 3)
    params = init_params(k_params)

    # One-time, hoisted param prep (f32 path; pass dtype=jnp.bfloat16 for throughput).
    w_stack, b_stack = prepare_params(params, dtype=jnp.float32)

    fwd = jax.jit(qn_agent_forward, static_argnames=("tile_b",))

    # Small online-inference batch (e.g. two flattened 3x3x3 board encodings).
    B = 2
    x = jax.random.uniform(k_x1, (B, IN_DIM), jnp.float32, -1.0, 1.0)
    out = jax.block_until_ready(fwd(x, w_stack, b_stack))
    ref = _reference_forward(x, params)
    assert out.shape == (B, OUT_DIM), out.shape
    assert jnp.allclose(out, ref, atol=1e-5, rtol=1e-5), "mismatch vs reference (B=2)"

    # Exercise a multi-step batch grid (3 tiles of 8 rows) to validate the tiling path.
    B2 = 20
    x2 = jax.random.uniform(k_x2, (B2, IN_DIM), jnp.float32, -1.0, 1.0)
    out2 = jax.block_until_ready(fwd(x2, w_stack, b_stack, tile_b=8))
    ref2 = _reference_forward(x2, params)
    assert out2.shape == (B2, OUT_DIM), out2.shape
    assert jnp.allclose(out2, ref2, atol=1e-5, rtol=1e-5), "mismatch vs reference (B=20)"

    print("KERNEL_OK")
</pallas_src>

<mosaic_0001>
module attributes {stable_mosaic.version = 11 : i64} {
  func.func @_qn_forward_kernel(%arg0: i32, %arg1: memref<8x32xf32, #tpu.memory_space<vmem>>, %arg2: memref<3x128x128xf32, #tpu.memory_space<vmem>>, %arg3: memref<3x1x128xf32, #tpu.memory_space<vmem>>, %arg4: memref<8x128xf32, #tpu.memory_space<vmem>>) attributes {dimension_semantics = [#tpu.dimension_semantics<parallel>], iteration_bounds = array<i64: 1>, scalar_prefetch = 0 : i64, scratch_operands = 0 : i64, tpu.core_type = #tpu.core_type<tc>, window_params = [{transform_indices = @transform_0, window_bounds = array<i64: 8, 32>}, {pipeline_mode = #tpu.pipeline_mode<synchronous>, transform_indices = @transform_1, window_bounds = array<i64: 3, 128, 128>}, {pipeline_mode = #tpu.pipeline_mode<synchronous>, transform_indices = @transform_2, window_bounds = array<i64: 3, 1, 128>}, {transform_indices = @transform_3, window_bounds = array<i64: 8, 128>}]} {
    %c0 = arith.constant 0 : index
    %c0_0 = arith.constant 0 : index
    %c0_1 = arith.constant 0 : index
    %0 = vector.load %arg2[%c0, %c0_0, %c0_1] : memref<3x128x128xf32, #tpu.memory_space<vmem>>, vector<1x32x128xf32>
    %1 = vector.shape_cast %0 : vector<1x32x128xf32> to vector<32x128xf32>
    %c1 = arith.constant 1 : index
    %c0_2 = arith.constant 0 : index
    %c0_3 = arith.constant 0 : index
    %2 = vector.load %arg2[%c1, %c0_2, %c0_3] : memref<3x128x128xf32, #tpu.memory_space<vmem>>, vector<1x128x128xf32>
    %3 = vector.shape_cast %2 : vector<1x128x128xf32> to vector<128x128xf32>
    %c2 = arith.constant 2 : index
    %c0_4 = arith.constant 0 : index
    %c0_5 = arith.constant 0 : index
    %4 = vector.load %arg2[%c2, %c0_4, %c0_5] : memref<3x128x128xf32, #tpu.memory_space<vmem>>, vector<1x128x128xf32>
    %5 = vector.shape_cast %4 : vector<1x128x128xf32> to vector<128x128xf32>
    %c0_6 = arith.constant 0 : index
    %c0_7 = arith.constant 0 : index
    %6 = vector.load %arg1[%c0_6, %c0_7] : memref<8x32xf32, #tpu.memory_space<vmem>>, vector<8x32xf32>
    %cst = arith.constant dense<0.000000e+00> : vector<8x128xf32>
    %7 = tpu.matmul %6, %1, %cst {dimension_numbers = #tpu.dot_dimension_numbers<[1], [0], [0], [1], [0, 0, 1, 1], [], []>} : vector<8x32xf32>, vector<32x128xf32>, vector<8x128xf32> -> vector<8x128xf32>
    %c0_8 = arith.constant 0 : index
    %c0_9 = arith.constant 0 : index
    %c0_10 = arith.constant 0 : index
    %8 = vector.load %arg3[%c0_8, %c0_9, %c0_10] : memref<3x1x128xf32, #tpu.memory_space<vmem>>, vector<1x1x128xf32>
    %9 = vector.shape_cast %8 : vector<1x1x128xf32> to vector<1x128xf32>
    %10 = vector.broadcast %9 : vector<1x128xf32> to vector<8x128xf32>
    %11 = arith.addf %7, %10 : vector<8x128xf32>
    %cst_11 = arith.constant 0.000000e+00 : f32
    %12 = vector.broadcast %cst_11 : f32 to vector<8x128xf32>
    %13 = arith.maximumf %11, %12 : vector<8x128xf32>
    %cst_12 = arith.constant dense<0.000000e+00> : vector<8x128xf32>
    %14 = tpu.matmul %13, %3, %cst_12 {dimension_numbers = #tpu.dot_dimension_numbers<[1], [0], [0], [1], [0, 0, 1, 1], [], []>} : vector<8x128xf32>, vector<128x128xf32>, vector<8x128xf32> -> vector<8x128xf32>
    %c1_13 = arith.constant 1 : index
    %c0_14 = arith.constant 0 : index
    %c0_15 = arith.constant 0 : index
    %15 = vector.load %arg3[%c1_13, %c0_14, %c0_15] : memref<3x1x128xf32, #tpu.memory_space<vmem>>, vector<1x1x128xf32>
    %16 = vector.shape_cast %15 : vector<1x1x128xf32> to vector<1x128xf32>
    %17 = vector.broadcast %16 : vector<1x128xf32> to vector<8x128xf32>
    %18 = arith.addf %14, %17 : vector<8x128xf32>
    %cst_16 = arith.constant 0.000000e+00 : f32
    %19 = vector.broadcast %cst_16 : f32 to vector<8x128xf32>
    %20 = arith.maximumf %18, %19 : vector<8x128xf32>
    %cst_17 = arith.constant dense<0.000000e+00> : vector<8x128xf32>
    %21 = tpu.matmul %20, %5, %cst_17 {dimension_numbers = #tpu.dot_dimension_numbers<[1], [0], [0], [1], [0, 0, 1, 1], [], []>} : vector<8x128xf32>, vector<128x128xf32>, vector<8x128xf32> -> vector<8x128xf32>
    %c2_18 = arith.constant 2 : index
    %c0_19 = arith.constant 0 : index
    %c0_20 = arith.constant 0 : index
    %22 = vector.load %arg3[%c2_18, %c0_19, %c0_20] : memref<3x1x128xf32, #tpu.memory_space<vmem>>, vector<1x1x128xf32>
    %23 = vector.shape_cast %22 : vector<1x1x128xf32> to vector<1x128xf32>
    %24 = vector.broadcast %23 : vector<1x128xf32> to vector<8x128xf32>
    %25 = arith.addf %21, %24 : vector<8x128xf32>
    %26 = math.tanh %25 : vector<8x128xf32>
    %c0_21 = arith.constant 0 : index
    %c0_22 = arith.constant 0 : index
    %27 = vector.load %arg4[%c0_21, %c0_22] : memref<8x128xf32, #tpu.memory_space<vmem>>, vector<8x128xf32>
    tpu.vector_store %arg4[%c0_21, %c0_22], %26 {strides = array<i32>} : memref<8x128xf32, #tpu.memory_space<vmem>>, vector<8x128xf32>,
    return
  }
  func.func @transform_0(%arg0: i32) -> (i32, i32) {
    %c0_i32 = arith.constant 0 : i32
    %c0_i32_0 = arith.constant 0 : i32
    return %arg0, %c0_i32 : i32, i32
  }
  func.func @transform_1(%arg0: i32) -> (i32, i32, i32) {
    %c0_i32 = arith.constant 0 : i32
    %c0_i32_0 = arith.constant 0 : i32
    %c0_i32_1 = arith.constant 0 : i32
    %c0_i32_2 = arith.constant 0 : i32
    return %c0_i32, %c0_i32_0, %c0_i32_1 : i32, i32, i32
  }
  func.func @transform_2(%arg0: i32) -> (i32, i32, i32) {
    %c0_i32 = arith.constant 0 : i32
    %c0_i32_0 = arith.constant 0 : i32
    %c0_i32_1 = arith.constant 0 : i32
    %c0_i32_2 = arith.constant 0 : i32
    return %c0_i32, %c0_i32_0, %c0_i32_1 : i32, i32, i32
  }
  func.func @transform_3(%arg0: i32) -> (i32, i32) {
    %c0_i32 = arith.constant 0 : i32
    %c0_i32_0 = arith.constant 0 : i32
    return %arg0, %c0_i32 : i32, i32
  }
}

</mosaic_0001>

<bundles_post_ra>
// kernel: qn_agent_forward.1
= control target key start
LH: loop header
LB: loop body
LE: loop exit
PB: predicated region body
PF: predicated region fallthrough
CT: control target
= control target key end

     0   :  { %8 = vsyncpa [#allocation3], 0  ;;  %s468_s12 = smov [#allocation2]   ;;  %s553_s0 = inlined_call_operand.vmem [shape: f32[8,32], index: 0, kind: input, shape index: {}]   ;;  %s554_s1 = inlined_call_operand.hbm [shape: f32[3,128,128], index: 1, kind: input, shape index: {}]   ;;  %s555_s2 = inlined_call_operand.vmem [shape: f32[3,1,128], index: 2, kind: input, shape index: {}]   ;;  %s556_s3 = inlined_call_operand.vmem [shape: f32[8,128], index: 3, kind: output, shape index: {}]  }
   0x1   :  { %s16_s13 = sshll.u32 %s468_s12, 4  ;;  %s17_s13 = int_to_ptr.vmem [resolvable:$true] %s16_s13 }
   0x2   :  { %s454_s14 = scalar_lea.vmem %s17_s13, 6144  ;;  %p459_p1 = scmp.lt.s32.totalorder %s17_s13, %s17_s13 }
   0x3   :  { %p455_p0 = scmp.ne.s32.totalorder %s17_s13, %s454_s14  ;;  %p460_p2 = scmp.lt.s32.totalorder %s454_s14, %s454_s14 }
   0x5   :  { %p461_p3 = por %p460_p2, %p459_p1 }
   0x7   :  { %p462_p4 = pnand %p461_p3, %p455_p0 }
   0x9   :  { %465 = shalt.err (!%p462_p4)
}
   0xa   :  { %s469_s15 = smov 128   ;;  %s470_s16 = smov 8  }
   0xb   :  { %22 = dma.hbm_to_vmem [thread:$0]  %s554_s1, 6144, %s17_s13, [#allocation3], %s469_s15, %s469_s15, %s470_s16  }
   0xc   :  { %466 = dma.done.wait [#allocation3], 6144  }
   0xd   :  { %467 = vsyncadd [#allocation3], 4294961152  ;;  %v471_v0 = vmov 0.0   ;;  %vm472_vm0 = vmmov 0   ;;  %v31_v1 = vld [vmem:[#allocation2 + $0x18] sm:$0xff]  ;;  %v30_v2 = vld [vmem:[#allocation2 + $0x10] sm:$0xff] }
   0xe   :  { %358 = vmatprep.subr.mxu0 %v471_v0  ;;  %366 = vmatprep.mubr.msk.f32.mxu0 %vm472_vm0, %v471_v0  ;;  %v48_v3 = vld [vmem:[#allocation2 + $0xf8] sm:$0xff]  ;;  %v29_v4 = vld [vmem:[#allocation2 + $0x8] sm:$0xff]  ;;  %v47_v5 = vld [vmem:[#allocation2 + $0xf0] sm:$0xff]  ;;  %vm74_vm1 = vcmask 261120  }
   0xf   :  { %369 = vmatprep.subr.mxu1 %v471_v0  ;;  %401 = vmatprep.mubr.msk.f32.mxu1 %vm472_vm0, %v471_v0  ;;  %v46_v6 = vld [vmem:[#allocation2 + $0xe8] sm:$0xff]  ;;  %v28_v7 = vld [vmem:[#allocation2] sm:$0xff]  ;;  %v44_v10 = vld [vmem:[#allocation2 + $0xd8] sm:$0xff] }
  0x10   :  { %359 = vmatpush3.msra.mxu0 %v31_v1  ;;  %370 = vmatpush3.msra.mxu1 %v48_v3  ;;  %v66_v8 = vld [vmem:[%s553_s0] sm:$0xff]  ;;  %v43_v11 = vld [vmem:[#allocation2 + $0xd0] sm:$0xff]  ;;  %v42_v12 = vld [vmem:[#allocation2 + $0xc8] sm:$0xff] }
  0x11   :  { %360 = vmatprep.subr.mxu0 %v471_v0  ;;  %371 = vmatprep.subr.mxu1 %v471_v0  ;;  %v45_v9 = vld [vmem:[#allocation2 + $0xe0] sm:$0xff]  ;;  %v40_v14 = vld [vmem:[#allocation2 + $0xb8] sm:$0xff]  ;;  %v39_v15 = vld [vmem:[#allocation2 + $0xb0] sm:$0xff] }
  0x12   :  { %361 = vmatpush3.msra.mxu0 %v30_v2  ;;  %372 = vmatpush3.msra.mxu1 %v47_v5  ;;  %v41_v13 = vld [vmem:[#allocation2 + $0xc0] sm:$0xff]  ;;  %v38_v16 = vld [vmem:[#allocation2 + $0xa8] sm:$0xff]  ;;  %v36_v18 = vld [vmem:[#allocation2 + $0x98] sm:$0xff] }
  0x13   :  { %362 = vmatprep.subr.mxu0 %v471_v0  ;;  %373 = vmatprep.subr.mxu1 %v471_v0  ;;  %v37_v17 = vld [vmem:[#allocation2 + $0xa0] sm:$0xff]  ;;  %v35_v19 = vld [vmem:[#allocation2 + $0x90] sm:$0xff]  ;;  %v34_v20 = vld [vmem:[#allocation2 + $0x88] sm:$0xff] }
  0x14   :  { %363 = vmatpush3.msra.mxu0 %v29_v4  ;;  %374 = vmatpush3.msra.mxu1 %v46_v6  ;;  %v33_v21 = vld [vmem:[#allocation2 + $0x80] sm:$0xff]  ;;  %v65_v22 = vld [vmem:[#allocation2 + $0x178] sm:$0xff]  ;;  %v64_v23 = vld [vmem:[#allocation2 + $0x170] sm:$0xff] }
  0x15   :  { %364 = vmatprep.subr.mxu0 %v471_v0  ;;  %375 = vmatprep.subr.mxu1 %v471_v0  ;;  %v63_v24 = vld [vmem:[#allocation2 + $0x168] sm:$0xff]  ;;  %v62_v25 = vld [vmem:[#allocation2 + $0x160] sm:$0xff]  ;;  %v61_v26 = vld [vmem:[#allocation2 + $0x158] sm:$0xff] }
  0x16   :  { %365 = vmatpush3.msra.mxu0 %v28_v7  ;;  %376 = vmatpush3.msra.mxu1 %v45_v9  ;;  %v60_v27 = vld [vmem:[#allocation2 + $0x150] sm:$0xff]  ;;  %v59_v28 = vld [vmem:[#allocation2 + $0x148] sm:$0xff]  ;;  %v58_v29 = vld [vmem:[#allocation2 + $0x140] sm:$0xff] }
  0x17   :  { %367 = vmatmul.mubr.msk.f32.vlgmr.msra.gmra.mxu0 %vm74_vm1, %v66_v8  ;;  %377 = vmatprep.subr.mxu1 %v471_v0  ;;  %v57_v30 = vld [vmem:[#allocation2 + $0x138] sm:$0xff]  ;;  %v56_v31 = vld [vmem:[#allocation2 + $0x130] sm:$0xff]  ;;  %v55_v32 = vld [vmem:[#allocation2 + $0x128] sm:$0xff] }
  0x18   :  { %404 = vmatprep.subr.mxu0 %v471_v0  ;;  %378 = vmatpush3.msra.mxu1 %v44_v10  ;;  %v54_v33 = vld [vmem:[#allocation2 + $0x120] sm:$0xff]  ;;  %v53_v34 = vld [vmem:[#allocation2 + $0x118] sm:$0xff]  ;;  %v52_v40 = vld [vmem:[#allocation2 + $0x110] sm:$0xff] }
  0x19   :  { %436 = vmatprep.mubr.msk.f32.mxu0 %vm472_vm0, %v471_v0  ;;  %379 = vmatprep.subr.mxu1 %v471_v0  ;;  %v313_v35 = vld [vmem:[%s555_s2] ss:$0 sm:$0xff]  ;;  %v51_v41 = vld [vmem:[#allocation2 + $0x108] sm:$0xff]  ;;  %v316_v43 = vld [vmem:[%s555_s2 + $0x1] ss:$0 sm:$0xff] }
  0x1a   :  { %380 = vmatpush3.msra.mxu1 %v43_v11  ;;  %405 = vmatpush3.msra.mxu0 %v65_v22  ;;  %v50_v42 = vld [vmem:[#allocation2 + $0x100] sm:$0xff] }
  0x1b   :  { %381 = vmatprep.subr.mxu1 %v471_v0  ;;  %406 = vmatprep.subr.mxu0 %v471_v0  ;;  %v318_v48 = vld [vmem:[%s555_s2 + $0x2] ss:$0 sm:$0xff] }
  0x1c   :  { %382 = vmatpush3.msra.mxu1 %v42_v12  ;;  %407 = vmatpush3.msra.mxu0 %v64_v23 }
  0x1d   :  { %383 = vmatprep.subr.mxu1 %v471_v0  ;;  %408 = vmatprep.subr.mxu0 %v471_v0 }
  0x1e   :  { %384 = vmatpush3.msra.mxu1 %v41_v13  ;;  %409 = vmatpush3.msra.mxu0 %v63_v24 }
  0x1f   :  { %385 = vmatprep.subr.mxu1 %v471_v0  ;;  %410 = vmatprep.subr.mxu0 %v471_v0 }
  0x20   :  { %386 = vmatpush3.msra.mxu1 %v40_v14  ;;  %411 = vmatpush3.msra.mxu0 %v62_v25 }
  0x21   :  { %387 = vmatprep.subr.mxu1 %v471_v0  ;;  %412 = vmatprep.subr.mxu0 %v471_v0 }
  0x22   :  { %388 = vmatpush3.msra.mxu1 %v39_v15  ;;  %413 = vmatpush3.msra.mxu0 %v61_v26 }
  0x23   :  { %389 = vmatprep.subr.mxu1 %v471_v0  ;;  %414 = vmatprep.subr.mxu0 %v471_v0 }
  0x24   :  { %390 = vmatpush3.msra.mxu1 %v38_v16  ;;  %415 = vmatpush3.msra.mxu0 %v60_v27 }
  0x25   :  { %391 = vmatprep.subr.mxu1 %v471_v0  ;;  %416 = vmatprep.subr.mxu0 %v471_v0 }
  0x26   :  { %392 = vmatpush3.msra.mxu1 %v37_v17  ;;  %417 = vmatpush3.msra.mxu0 %v59_v28 }
  0x27   :  { %393 = vmatprep.subr.mxu1 %v471_v0  ;;  %418 = vmatprep.subr.mxu0 %v471_v0 }
  0x28   :  { %394 = vmatpush3.msra.mxu1 %v36_v18  ;;  %419 = vmatpush3.msra.mxu0 %v58_v29 }
  0x29   :  { %395 = vmatprep.subr.mxu1 %v471_v0  ;;  %420 = vmatprep.subr.mxu0 %v471_v0 }
  0x2a   :  { %396 = vmatpush3.msra.mxu1 %v35_v19  ;;  %421 = vmatpush3.msra.mxu0 %v57_v30 }
  0x2b   :  { %397 = vmatprep.subr.mxu1 %v471_v0  ;;  %422 = vmatprep.subr.mxu0 %v471_v0 }
  0x2c   :  { %398 = vmatpush3.msra.mxu1 %v34_v20  ;;  %423 = vmatpush3.msra.mxu0 %v56_v31 }
  0x2d   :  { %399 = vmatprep.subr.mxu1 %v471_v0  ;;  %424 = vmatprep.subr.mxu0 %v471_v0 }
  0x2e   :  { %400 = vmatpush3.msra.mxu1 %v33_v21  ;;  %425 = vmatpush3.msra.mxu0 %v55_v32 }
  0x2f   :  { %426 = vmatprep.subr.mxu0 %v471_v0 }
  0x30   :  { %427 = vmatpush3.msra.mxu0 %v54_v33 }
  0x31   :  { %428 = vmatprep.subr.mxu0 %v471_v0 }
  0x32   :  { %429 = vmatpush3.msra.mxu0 %v53_v34 }
  0x33   :  { %430 = vmatprep.subr.mxu0 %v471_v0 }
  0x34   :  { %431 = vmatpush3.msra.mxu0 %v52_v40 }
  0x35   :  { %432 = vmatprep.subr.mxu0 %v471_v0 }
  0x36   :  { %433 = vmatpush3.msra.mxu0 %v51_v41 }
  0x37   :  { %434 = vmatprep.subr.mxu0 %v471_v0 }
  0x38   :  { %435 = vmatpush3.msra.mxu0 %v50_v42 }
  0xd7   :  { %v144_v36 = vpop.f32.mrf.mxu0 }
  0xd8   :  { %v145_v37 = vadd.f32 %v313_v35, %v144_v36 }
  0xd9   :  { %v368_v38 = vpop.f32.mrf.mxu0 }
  0xda   :  { %v148_v39 = vmax.f32 %v145_v37, 0.0 }
  0xdc   :  { %402 = vmatmul.mubr.f32.vlgmr.msra.gmra.mxu1 %v148_v39 }
 0x19c   :  { %v223_v44 = vpop.f32.mrf.mxu1 }
 0x19d   :  { %v224_v45 = vadd.f32 %v316_v43, %v223_v44 }
 0x19e   :  { %v403_v46 = vpop.f32.mrf.mxu1 }
 0x19f   :  { %v227_v47 = vmax.f32 %v224_v45, 0.0 }
 0x1a1   :  { %437 = vmatmul.mubr.f32.vlgmr.msra.gmra.mxu0 %v227_v47 }
 0x261   :  { %v302_v49 = vpop.f32.mrf.mxu0 }
 0x262   :  { %v303_v50 = vadd.f32 %v318_v48, %v302_v49 }
 0x263   :  { %v438_v51 = vpop.f32.mrf.mxu0 }
 0x264   :  { %444 = vtanh.f32 %v303_v50 }
 0x271   :  { %v445_v52 = vpop.eup %444 }
 0x272   :  { %307 = vst [vmem:[%s556_s3] sm:$0xff] %v445_v52 }
 0x273   :  { %312 = vsyncpa [#allocation3], 1 }

</bundles_post_ra>
